<compile_context>
chip_gen: v7x
topology: tpu7x:2x2x1
jax: 0.10.0
libtpu: 0.0.40
codegen_flags: <defaults>
</compile_context>

<pallas_src>
import jax
import jax.numpy as jnp
from jax import lax
from jax.experimental import pallas as pl
from jax.experimental.pallas import tpu as pltpu

LANE = 128   # TPU lane width: feature / cluster dims padded to a multiple of this.
SUBLANE = 8  # sublane width: node dim padded to a multiple of this.


def _round_up(d, m=LANE):
    return ((d + m - 1) // m) * m


def _linear(h, w_ref):
    """F.linear(h, W) == h @ W.T: contract h axis 1 with W's 'in' axis (axis 1).
    MXU inputs in bf16, f32 accumulation."""
    return lax.dot_general(
        h.astype(jnp.bfloat16), w_ref[...],
        dimension_numbers=(((1,), (1,)), ((), ())),
        preferred_element_type=jnp.float32)


def igae_kernel(x_ref, adj_ref, w1_ref, w2_ref, w3_ref, wc_ref, bc_ref,
                z_ref, c_ref):
    # adj cast to bf16 once; reused by all three propagation matmuls.
    adj = adj_ref[...].astype(jnp.bfloat16)

    # GNN layer 1 (active=True -> tanh), f32 elementwise math on EUP/VPU.
    s1 = jnp.tanh(_linear(x_ref[...], w1_ref))                    # [N, E1] f32
    z1 = jnp.dot(adj, s1.astype(jnp.bfloat16),
                 preferred_element_type=jnp.float32)

    # GNN layer 2 (active=True -> tanh).
    s2 = jnp.tanh(_linear(z1, w2_ref))                            # [N, E2] f32
    z2 = jnp.dot(adj, s2.astype(jnp.bfloat16),
                 preferred_element_type=jnp.float32)

    # GNN layer 3 (no activation).
    s3 = _linear(z2, w3_ref)                                      # [N, E3] f32
    z_igae = jnp.dot(adj, s3.astype(jnp.bfloat16),
                     preferred_element_type=jnp.float32)
    z_ref[...] = z_igae                                           # lane-dense store

    # Cluster layer: Linear + softmax(dim=1).  Padded cluster lanes carry a -1e30
    # bias, so they vanish in exp() and do not perturb the row max / sum.
    logits = _linear(z_igae, wc_ref) + bc_ref[...]                # [N, C] f32
    m = jnp.max(logits, axis=1, keepdims=True)
    e = jnp.exp(logits - m)
    inv = pl.reciprocal(jnp.sum(e, axis=1, keepdims=True), approx=True)
    c_ref[...] = e * inv                                          # lane-dense store


def prepare_params(w1, w2, w3, wc, bc):
    """One-time parameter prep (outside the per-step hot path).

    Keeps the PyTorch [out, in] layout (no transposes anywhere), zero-pads every
    out/in feature dim to a multiple of 128 lanes, stores MXU operands as bf16,
    and builds a 2-D f32 bias row with -1e30 in the padded cluster lanes.
    """
    n_input = w1.shape[1]
    enc1, enc2, enc3 = w1.shape[0], w2.shape[0], w3.shape[0]
    clusters = wc.shape[0]
    E1, E2, E3, C = map(_round_up, (enc1, enc2, enc3, clusters))

    def pad_to(w, out_p, in_p):
        w = jnp.asarray(w, jnp.float32)
        return jnp.pad(w, ((0, out_p - w.shape[0]),
                           (0, in_p - w.shape[1]))).astype(jnp.bfloat16)

    return {
        "w1": pad_to(w1, E1, n_input),   # contraction (in) dim of x left as-is
        "w2": pad_to(w2, E2, E1),
        "w3": pad_to(w3, E3, E2),
        "wc": pad_to(wc, C, E3),
        "bc": jnp.full((1, C), -1e30, jnp.float32).at[0, :clusters].set(
            jnp.asarray(bc, jnp.float32)),
        "enc3": enc3,
        "clusters": clusters,
    }


def igae_forward(x, adj, params):
    """x: [N, n_input] f32, adj: [N, N] f32 dense adjacency.
    Returns (z_igae [N, enc3], c [N, clusters]) matching the PyTorch module."""
    x = jnp.asarray(x, jnp.float32)
    adj = jnp.asarray(adj, jnp.float32)
    w1p, w2p, w3p, wcp, bcp = (params["w1"], params["w2"], params["w3"],
                               params["wc"], params["bc"])
    N, n_in = x.shape
    E1, E2, E3, C = w1p.shape[0], w2p.shape[0], w3p.shape[0], wcp.shape[0]

    # Sublane-align the node dim (zero rows/cols are exact no-ops for the math).
    Np = _round_up(N, SUBLANE)
    if Np != N:
        x = jnp.pad(x, ((0, Np - N), (0, 0)))
        adj = jnp.pad(adj, ((0, Np - N), (0, Np - N)))

    # Advisory cost estimate so XLA schedules surrounding ops around the call.
    flops = 2 * Np * (n_in * E1 + E1 * E2 + E2 * E3 + E3 * C) \
        + 2 * Np * Np * (E1 + E2 + E3)
    transcendentals = Np * (E1 + E2 + C)
    bytes_accessed = 4 * (Np * n_in + Np * Np + Np * E3 + Np * C) \
        + 2 * (w1p.size + w2p.size + w3p.size + wcp.size) + 4 * C
    cost = pl.CostEstimate(flops=flops, transcendentals=transcendentals,
                           bytes_accessed=bytes_accessed)

    vmem = pl.BlockSpec(memory_space=pltpu.MemorySpace.VMEM)
    z_pad, c_pad = pl.pallas_call(
        igae_kernel,
        out_shape=(
            jax.ShapeDtypeStruct((Np, E3), jnp.float32),
            jax.ShapeDtypeStruct((Np, C), jnp.float32),
        ),
        in_specs=[vmem] * 7,
        out_specs=(vmem, vmem),
        compiler_params=pltpu.CompilerParams(vmem_limit_bytes=64 * 1024 * 1024),
        cost_estimate=cost,
    )(x, adj, w1p, w2p, w3p, wcp, bcp)

    # Strip lane / sublane padding back to the module's logical output shapes.
    return z_pad[:N, :params["enc3"]], c_pad[:N, :params["clusters"]]


def xavier_uniform(key, out_f, in_f):
    a = jnp.sqrt(6.0 / (in_f + out_f))
    return jax.random.uniform(key, (out_f, in_f), jnp.float32, -a, a)


if __name__ == "__main__":
    # Small shapes consistent with the module's forward.
    N = 16            # graph nodes
    n_input = 32
    enc1, enc2, enc3 = 32, 32, 16
    clusters = 8

    key = jax.random.PRNGKey(0)
    k_x, k_a, k1, k2, k3, kc, kb = jax.random.split(key, 7)

    x = jax.random.normal(k_x, (N, n_input), jnp.float32)
    a_raw = jax.random.uniform(k_a, (N, N), jnp.float32)
    adj = (a_raw + a_raw.T) / (2.0 * N)          # symmetric, roughly normalized

    # GNNLayer weights: xavier_uniform, PyTorch shape [out_features, in_features].
    w1 = xavier_uniform(k1, enc1, n_input)
    w2 = xavier_uniform(k2, enc2, enc1)
    w3 = xavier_uniform(k3, enc3, enc2)
    # Cluster_layer Linear: uniform init with kaiming-style bound.
    bound = 1.0 / jnp.sqrt(enc3)
    wc = jax.random.uniform(kc, (clusters, enc3), jnp.float32, -bound, bound)
    bc = jax.random.uniform(kb, (clusters,), jnp.float32, -bound, bound)

    params = prepare_params(w1, w2, w3, wc, bc)   # one-time prep, off the hot path
    z_igae, c = igae_forward(x, adj, params)
    jax.block_until_ready((z_igae, c))

    # Sanity: pure-JAX f32 reference of the same forward (kernel uses bf16 MXU
    # inputs with f32 accumulation, so compare at a bf16-appropriate tolerance).
    s1 = jnp.tanh(x @ w1.T); z1 = adj @ s1
    s2 = jnp.tanh(z1 @ w2.T); z2 = adj @ s2
    z_ref = adj @ (z2 @ w3.T)
    c_ref = jax.nn.softmax(z_ref @ wc.T + bc, axis=1)
    assert z_igae.shape == (N, enc3) and c.shape == (N, clusters)
    assert jnp.allclose(z_igae, z_ref, atol=2e-2, rtol=2e-2), "z_igae mismatch"
    assert jnp.allclose(c, c_ref, atol=2e-2, rtol=2e-2), "c mismatch"

    print("KERNEL_OK")
</pallas_src>

<mosaic_0001>
module attributes {stable_mosaic.version = 11 : i64} {
  func.func @igae_kernel(%arg0: memref<16x32xf32, #tpu.memory_space<vmem>>, %arg1: memref<16x16xf32, #tpu.memory_space<vmem>>, %arg2: memref<128x32xbf16, #tpu.memory_space<vmem>>, %arg3: memref<128x128xbf16, #tpu.memory_space<vmem>>, %arg4: memref<128x128xbf16, #tpu.memory_space<vmem>>, %arg5: memref<128x128xbf16, #tpu.memory_space<vmem>>, %arg6: memref<1x128xf32, #tpu.memory_space<vmem>>, %arg7: memref<16x128xf32, #tpu.memory_space<vmem>>, %arg8: memref<16x128xf32, #tpu.memory_space<vmem>>) attributes {dimension_semantics = [], scalar_prefetch = 0 : i64, scratch_operands = 0 : i64, tpu.core_type = #tpu.core_type<tc>} {
    %c0 = arith.constant 0 : index
    %c0_0 = arith.constant 0 : index
    %0 = vector.load %arg1[%c0, %c0_0] : memref<16x16xf32, #tpu.memory_space<vmem>>, vector<16x16xf32>
    %1 = arith.truncf %0 : vector<16x16xf32> to vector<16x16xbf16>
    %c0_1 = arith.constant 0 : index
    %c0_2 = arith.constant 0 : index
    %2 = vector.load %arg0[%c0_1, %c0_2] : memref<16x32xf32, #tpu.memory_space<vmem>>, vector<16x32xf32>
    %3 = arith.truncf %2 : vector<16x32xf32> to vector<16x32xbf16>
    %c0_3 = arith.constant 0 : index
    %c0_4 = arith.constant 0 : index
    %4 = vector.load %arg2[%c0_3, %c0_4] : memref<128x32xbf16, #tpu.memory_space<vmem>>, vector<128x32xbf16>
    %cst = arith.constant dense<0.000000e+00> : vector<16x128xf32>
    %5 = tpu.matmul %3, %4, %cst {dimension_numbers = #tpu.dot_dimension_numbers<[1], [1], [0], [0], [0, 0, 1, 0], [], []>} : vector<16x32xbf16>, vector<128x32xbf16>, vector<16x128xf32> -> vector<16x128xf32>
    %6 = math.tanh %5 : vector<16x128xf32>
    %7 = arith.truncf %6 : vector<16x128xf32> to vector<16x128xbf16>
    %cst_5 = arith.constant dense<0.000000e+00> : vector<16x128xf32>
    %8 = tpu.matmul %1, %7, %cst_5 {dimension_numbers = #tpu.dot_dimension_numbers<[1], [0], [0], [1], [0, 0, 1, 1], [], []>} : vector<16x16xbf16>, vector<16x128xbf16>, vector<16x128xf32> -> vector<16x128xf32>
    %9 = arith.truncf %8 : vector<16x128xf32> to vector<16x128xbf16>
    %c0_6 = arith.constant 0 : index
    %c0_7 = arith.constant 0 : index
    %10 = vector.load %arg3[%c0_6, %c0_7] : memref<128x128xbf16, #tpu.memory_space<vmem>>, vector<128x128xbf16>
    %cst_8 = arith.constant dense<0.000000e+00> : vector<16x128xf32>
    %11 = tpu.matmul %9, %10, %cst_8 {dimension_numbers = #tpu.dot_dimension_numbers<[1], [1], [0], [0], [0, 0, 1, 0], [], []>} : vector<16x128xbf16>, vector<128x128xbf16>, vector<16x128xf32> -> vector<16x128xf32>
    %12 = math.tanh %11 : vector<16x128xf32>
    %13 = arith.truncf %12 : vector<16x128xf32> to vector<16x128xbf16>
    %cst_9 = arith.constant dense<0.000000e+00> : vector<16x128xf32>
    %14 = tpu.matmul %1, %13, %cst_9 {dimension_numbers = #tpu.dot_dimension_numbers<[1], [0], [0], [1], [0, 0, 1, 1], [], []>} : vector<16x16xbf16>, vector<16x128xbf16>, vector<16x128xf32> -> vector<16x128xf32>
    %15 = arith.truncf %14 : vector<16x128xf32> to vector<16x128xbf16>
    %c0_10 = arith.constant 0 : index
    %c0_11 = arith.constant 0 : index
    %16 = vector.load %arg4[%c0_10, %c0_11] : memref<128x128xbf16, #tpu.memory_space<vmem>>, vector<128x128xbf16>
    %cst_12 = arith.constant dense<0.000000e+00> : vector<16x128xf32>
    %17 = tpu.matmul %15, %16, %cst_12 {dimension_numbers = #tpu.dot_dimension_numbers<[1], [1], [0], [0], [0, 0, 1, 0], [], []>} : vector<16x128xbf16>, vector<128x128xbf16>, vector<16x128xf32> -> vector<16x128xf32>
    %18 = arith.truncf %17 : vector<16x128xf32> to vector<16x128xbf16>
    %cst_13 = arith.constant dense<0.000000e+00> : vector<16x128xf32>
    %19 = tpu.matmul %1, %18, %cst_13 {dimension_numbers = #tpu.dot_dimension_numbers<[1], [0], [0], [1], [0, 0, 1, 1], [], []>} : vector<16x16xbf16>, vector<16x128xbf16>, vector<16x128xf32> -> vector<16x128xf32>
    %c0_14 = arith.constant 0 : index
    %c0_15 = arith.constant 0 : index
    %20 = vector.load %arg7[%c0_14, %c0_15] : memref<16x128xf32, #tpu.memory_space<vmem>>, vector<16x128xf32>
    tpu.vector_store %arg7[%c0_14, %c0_15], %19 {strides = array<i32>} : memref<16x128xf32, #tpu.memory_space<vmem>>, vector<16x128xf32>,
    %21 = arith.truncf %19 : vector<16x128xf32> to vector<16x128xbf16>
    %c0_16 = arith.constant 0 : index
    %c0_17 = arith.constant 0 : index
    %22 = vector.load %arg5[%c0_16, %c0_17] : memref<128x128xbf16, #tpu.memory_space<vmem>>, vector<128x128xbf16>
    %cst_18 = arith.constant dense<0.000000e+00> : vector<16x128xf32>
    %23 = tpu.matmul %21, %22, %cst_18 {dimension_numbers = #tpu.dot_dimension_numbers<[1], [1], [0], [0], [0, 0, 1, 0], [], []>} : vector<16x128xbf16>, vector<128x128xbf16>, vector<16x128xf32> -> vector<16x128xf32>
    %c0_19 = arith.constant 0 : index
    %c0_20 = arith.constant 0 : index
    %24 = vector.load %arg6[%c0_19, %c0_20] : memref<1x128xf32, #tpu.memory_space<vmem>>, vector<1x128xf32>
    %25 = vector.broadcast %24 : vector<1x128xf32> to vector<16x128xf32>
    %26 = arith.addf %23, %25 : vector<16x128xf32>
    %cst_21 = arith.constant dense<0xFF800000> : vector<16xf32>
    %27 = vector.multi_reduction <maximumf>, %26, %cst_21 [1] : vector<16x128xf32> to vector<16xf32>
    %28 = vector.shape_cast %27 : vector<16xf32> to vector<16x1xf32>
    %29 = vector.broadcast %28 : vector<16x1xf32> to vector<16x128xf32>
    %30 = arith.subf %26, %29 : vector<16x128xf32>
    %31 = math.exp %30 : vector<16x128xf32>
    %cst_22 = arith.constant dense<0.000000e+00> : vector<16xf32>
    %32 = vector.multi_reduction <add>, %31, %cst_22 [1] : vector<16x128xf32> to vector<16xf32>
    %33 = vector.shape_cast %32 : vector<16xf32> to vector<16x1xf32>
    %34 = tpu.reciprocal %33 {approx = true} : vector<16x1xf32> -> vector<16x1xf32>
    %35 = vector.broadcast %34 : vector<16x1xf32> to vector<16x128xf32>
    %36 = arith.mulf %31, %35 : vector<16x128xf32>
    %c0_23 = arith.constant 0 : index
    %c0_24 = arith.constant 0 : index
    %37 = vector.load %arg8[%c0_23, %c0_24] : memref<16x128xf32, #tpu.memory_space<vmem>>, vector<16x128xf32>
    tpu.vector_store %arg8[%c0_23, %c0_24], %36 {strides = array<i32>} : memref<16x128xf32, #tpu.memory_space<vmem>>, vector<16x128xf32>,
    return
  }
}

</mosaic_0001>

<bundles_post_ra>
// kernel: tpu_custom_call.1
= control target key start
LH: loop header
LB: loop body
LE: loop exit
PB: predicated region body
PF: predicated region fallthrough
CT: control target
= control target key end

     0   :  { %14 = vsyncpa [#allocation3], 0  ;;  %s1480_s0 = inlined_call_operand.hbm [shape: f32[16,32], index: 0, kind: input, shape index: {}]   ;;  %s1481_s1 = inlined_call_operand.hbm [shape: f32[16,16], index: 1, kind: input, shape index: {}]   ;;  %s1482_s2 = inlined_call_operand.hbm [shape: bf16[128,32], index: 2, kind: input, shape index: {}]   ;;  %s1483_s3 = inlined_call_operand.hbm [shape: bf16[128,128], index: 3, kind: input, shape index: {}]   ;;  %s1484_s4 = inlined_call_operand.hbm [shape: bf16[128,128], index: 4, kind: input, shape index: {}]   ;;  %s1485_s5 = inlined_call_operand.hbm [shape: bf16[128,128], index: 5, kind: input, shape index: {}]   ;;  %s1486_s6 = inlined_call_operand.hbm [shape: f32[1,128], index: 6, kind: input, shape index: {}]   ;;  %s1487_s7 = inlined_call_operand.hbm [shape: f32[16,128], index: 7, kind: output, shape index: {0}]   ;;  %s1488_s8 = inlined_call_operand.hbm [shape: f32[16,128], index: 8, kind: output, shape index: {1}]  }
   0x1   :  { %15 = vsyncpa [#allocation6], 0 }
   0x2   :  { %16 = vsyncpa [#allocation9], 0 }
   0x3   :  { %17 = vsyncpa [#allocation12], 0 }
   0x4   :  { %18 = vsyncpa [#allocation4], 0 }
   0x5   :  { %19 = vsyncpa [#allocation16], 0  ;;  %s1222_s27 = smov [#allocation5]   ;;  %s1012_s9 = scalar_lea.hbm %s1481_s1, 256 }
   0x6   :  { %s37_s28 = sshll.u32 %s1222_s27, 4  ;;  %p1013_p0 = scmp.ne.s32.totalorder %s1481_s1, %s1012_s9  ;;  %s38_s28 = int_to_ptr.vmem [resolvable:$true] %s37_s28 }
   0x7   :  { %p1016_p1 = scmp.lt.u32.totalorder %s1012_s9, %s1481_s1 }
   0x9   :  { %p1018_p2 = pnand %p1016_p1, %p1013_p0 }
   0xb   :  { %1021 = shalt.err (!%p1018_p2)
}
   0xc   :  { %s1022_s14 = scalar_lea.vmem %s38_s28, 256  ;;  %p1027_p4 = scmp.lt.s32.totalorder %s38_s28, %s38_s28 }
   0xd   :  { %p1023_p3 = scmp.ne.s32.totalorder %s38_s28, %s1022_s14  ;;  %p1028_p5 = scmp.lt.s32.totalorder %s1022_s14, %s1022_s14 }
   0xf   :  { %p1029_p6 = por %p1028_p5, %p1027_p4 }
  0x11   :  { %p1030_p7 = pnand %p1029_p6, %p1023_p3 }
  0x13   :  { %1033 = shalt.err (!%p1030_p7)
}
  0x14   :  { %s1223_s15 = smov 128   ;;  %s1224_s16 = smov 8  }
  0x15   :  { %43 = dma.hbm_to_vmem [thread:$0]  %s1481_s1, 256, %s38_s28, [#allocation6], %s1223_s15, %s1223_s15, %s1224_s16  }
  0x16   :  { %s1225_s19 = smov [#allocation8]   ;;  %s1226_s21 = smov [#allocation11]  }
  0x17   :  { %s61_s20 = sshll.u32 %s1225_s19, 4  ;;  %s85_s22 = sshll.u32 %s1226_s21, 4  ;;  %s62_s20 = int_to_ptr.vmem [resolvable:$true] %s61_s20  ;;  %s86_s22 = int_to_ptr.vmem [resolvable:$true] %s85_s22 }
  0x18   :  { %s1034_s25 = scalar_lea.hbm %s1483_s3, 1024 }
  0x19   :  { %p1035_p8 = scmp.ne.s32.totalorder %s1483_s3, %s1034_s25  ;;  %p1038_p9 = scmp.lt.u32.totalorder %s1034_s25, %s1483_s3 }
  0x1b   :  { %p1040_p10 = pnand %p1038_p9, %p1035_p8 }
  0x1d   :  { %1043 = shalt.err (!%p1040_p10)
}
  0x1e   :  { %s1044_s1 = scalar_lea.vmem %s62_s20, 1024  ;;  %p1049_p12 = scmp.lt.s32.totalorder %s62_s20, %s62_s20 }
  0x1f   :  { %p1045_p11 = scmp.ne.s32.totalorder %s62_s20, %s1044_s1  ;;  %p1050_p13 = scmp.lt.s32.totalorder %s1044_s1, %s1044_s1 }
  0x21   :  { %p1051_p0 = por %p1050_p13, %p1049_p12 }
  0x23   :  { %p1052_p1 = pnand %p1051_p0, %p1045_p11 }
  0x25   :  { %1055 = shalt.err (!%p1052_p1)
}
  0x26   :  { %s1227_s28 = smov 64   ;;  %s1228_s9 = smov 4  }
  0x27   :  { %67 = dma.hbm_to_vmem [thread:$0]  %s1483_s3, 1024, %s62_s20, [#allocation9], %s1227_s28, %s1227_s28, %s1228_s9  }
  0x28   :  { %s1056_s14 = scalar_lea.hbm %s1485_s5, 1024 }
  0x29   :  { %p1057_p2 = scmp.ne.s32.totalorder %s1485_s5, %s1056_s14  ;;  %p1060_p3 = scmp.lt.u32.totalorder %s1056_s14, %s1485_s5 }
  0x2b   :  { %p1062_p4 = pnand %p1060_p3, %p1057_p2 }
  0x2d   :  { %1065 = shalt.err (!%p1062_p4)
}
  0x2e   :  { %s1066_s23 = scalar_lea.vmem %s86_s22, 1024  ;;  %p1071_p6 = scmp.lt.s32.totalorder %s86_s22, %s86_s22 }
  0x2f   :  { %p1067_p5 = scmp.ne.s32.totalorder %s86_s22, %s1066_s23  ;;  %p1072_p7 = scmp.lt.s32.totalorder %s1066_s23, %s1066_s23 }
  0x31   :  { %p1073_p8 = por %p1072_p7, %p1071_p6 }
  0x33   :  { %p1074_p9 = pnand %p1073_p8, %p1067_p5 }
  0x35   :  { %1077 = shalt.err (!%p1074_p9)
}
  0x36   :  { %91 = dma.hbm_to_vmem [thread:$0]  %s1485_s5, 1024, %s86_s22, [#allocation12], %s1227_s28, %s1227_s28, %s1228_s9  }
  0x37   :  { %s1229_s24 = smov [#allocation2]   ;;  %s1230_s26 = smov [#allocation7]  }
  0x38   :  { %s25_s25 = sshll.u32 %s1229_s24, 4  ;;  %s49_s27 = sshll.u32 %s1230_s26, 4  ;;  %s26_s25 = int_to_ptr.vmem [resolvable:$true] %s25_s25  ;;  %s50_s27 = int_to_ptr.vmem [resolvable:$true] %s49_s27 }
  0x39   :  { %s1078_s1 = scalar_lea.hbm %s1480_s0, 256 }
  0x3a   :  { %p1079_p10 = scmp.ne.s32.totalorder %s1480_s0, %s1078_s1  ;;  %p1082_p11 = scmp.lt.u32.totalorder %s1078_s1, %s1480_s0 }
  0x3c   :  { %p1084_p12 = pnand %p1082_p11, %p1079_p10 }
  0x3e   :  { %1087 = shalt.err (!%p1084_p12)
}
  0x3f   :  { %s1088_s5 = scalar_lea.vmem %s26_s25, 256  ;;  %p1093_p0 = scmp.lt.s32.totalorder %s26_s25, %s26_s25 }
  0x40   :  { %p1089_p13 = scmp.ne.s32.totalorder %s26_s25, %s1088_s5  ;;  %p1094_p1 = scmp.lt.s32.totalorder %s1088_s5, %s1088_s5 }
  0x42   :  { %p1095_p2 = por %p1094_p1, %p1093_p0 }
  0x44   :  { %p1096_p3 = pnand %p1095_p2, %p1089_p13 }
  0x46   :  { %1099 = shalt.err (!%p1096_p3)
}
  0x47   :  { %31 = dma.hbm_to_vmem [thread:$0]  %s1480_s0, 256, %s26_s25, [#allocation3], %s1223_s15, %s1223_s15, %s1224_s16  }
  0x48   :  { %s1100_s19 = scalar_lea.hbm %s1482_s2, 1024 }
  0x49   :  { %p1101_p4 = scmp.ne.s32.totalorder %s1482_s2, %s1100_s19  ;;  %p1104_p5 = scmp.lt.u32.totalorder %s1100_s19, %s1482_s2 }
  0x4b   :  { %p1106_p6 = pnand %p1104_p5, %p1101_p4 }
  0x4d   :  { %1109 = shalt.err (!%p1106_p6)
}
  0x4e   :  { %s1110_s24 = scalar_lea.vmem %s50_s27, 1024  ;;  %p1115_p8 = scmp.lt.s32.totalorder %s50_s27, %s50_s27 }
  0x4f   :  { %p1111_p7 = scmp.ne.s32.totalorder %s50_s27, %s1110_s24  ;;  %p1116_p9 = scmp.lt.s32.totalorder %s1110_s24, %s1110_s24 }
  0x51   :  { %p1117_p10 = por %p1116_p9, %p1115_p8 }
  0x53   :  { %p1118_p11 = pnand %p1117_p10, %p1111_p7 }
  0x55   :  { %1121 = shalt.err (!%p1118_p11)
}
  0x56   :  { %55 = dma.hbm_to_vmem [thread:$0]  %s1482_s2, 1024, %s50_s27, [#allocation6], %s1227_s28, %s1227_s28, %s1228_s9  }
  0x57   :  { %s1231_s26 = smov [#allocation10]   ;;  %s1232_s30 = smov [#allocation13]  }
  0x58   :  { %s73_s29 = sshll.u32 %s1231_s26, 4  ;;  %s98_s1 = sshll.u32 %s1232_s30, 4  ;;  %s74_s29 = int_to_ptr.vmem [resolvable:$true] %s73_s29  ;;  %s99_s1 = int_to_ptr.vmem [resolvable:$true] %s98_s1 }
  0x59   :  { %s1122_s12 = scalar_lea.hbm %s1484_s4, 1024 }
  0x5a   :  { %p1123_p12 = scmp.ne.s32.totalorder %s1484_s4, %s1122_s12  ;;  %p1126_p13 = scmp.lt.u32.totalorder %s1122_s12, %s1484_s4 }
  0x5c   :  { %p1128_p0 = pnand %p1126_p13, %p1123_p12 }
  0x5e   :  { %1131 = shalt.err (!%p1128_p0)
}
  0x5f   :  { %s1132_s2 = scalar_lea.vmem %s74_s29, 1024  ;;  %p1137_p2 = scmp.lt.s32.totalorder %s74_s29, %s74_s29 }
  0x60   :  { %p1133_p1 = scmp.ne.s32.totalorder %s74_s29, %s1132_s2  ;;  %p1138_p3 = scmp.lt.s32.totalorder %s1132_s2, %s1132_s2 }
  0x62   :  { %p1139_p4 = por %p1138_p3, %p1137_p2 }
  0x64   :  { %p1140_p5 = pnand %p1139_p4, %p1133_p1 }
  0x66   :  { %1143 = shalt.err (!%p1140_p5)
}
  0x67   :  { %79 = dma.hbm_to_vmem [thread:$0]  %s1484_s4, 1024, %s74_s29, [#allocation9], %s1227_s28, %s1227_s28, %s1228_s9  }
  0x68   :  { %s1144_s21 = scalar_lea.hbm %s1486_s6, 16 }
  0x69   :  { %p1145_p6 = scmp.ne.s32.totalorder %s1486_s6, %s1144_s21  ;;  %p1148_p7 = scmp.lt.u32.totalorder %s1144_s21, %s1486_s6 }
  0x6b   :  { %p1150_p8 = pnand %p1148_p7, %p1145_p6 }
  0x6d   :  { %1153 = shalt.err (!%p1150_p8)
}
  0x6e   :  { %s1154_s0 = scalar_lea.vmem %s99_s1, 16  ;;  %s1158_s25 = scalar_lea.vmem %s99_s1, 32 }
  0x6f   :  { %p1155_p9 = scmp.ne.s32.totalorder %s99_s1, %s1154_s0  ;;  %p1159_p10 = scmp.lt.s32.totalorder %s99_s1, %s99_s1 }
  0x70   :  { %p1160_p11 = scmp.lt.s32.totalorder %s1158_s25, %s1154_s0 }
  0x72   :  { %p1161_p12 = por %p1160_p11, %p1159_p10 }
  0x74   :  { %p1162_p13 = pnand %p1161_p12, %p1155_p9 }
  0x76   :  { %1165 = shalt.err (!%p1162_p13)
}
  0x77   :  { %101 = dma.hbm_to_vmem [thread:$0]  %s1486_s6, 16, %s99_s1, [#allocation12]  }
  0x78   :  { %1210 = dma.done.wait [#allocation3], 256  }
  0x79   :  { %1211 = vsyncadd [#allocation3], 4294967040 }
  0x7a   :  { %1212 = dma.done.wait [#allocation6], 1280  }
  0x7b   :  { %1213 = vsyncadd [#allocation6], 4294966016 }
  0x7c   :  { %1214 = dma.done.wait [#allocation9], 2048  }
  0x7d   :  { %1215 = vsyncadd [#allocation9], 4294965248 }
  0x7e   :  { %1216 = dma.done.wait [#allocation12], 1040  }
  0x7f   :  { %1217 = vsyncadd [#allocation12], 4294966256  ;;  %v1233_v0 = vmov 0.0   ;;  %vm1234_vm0 = vmmov 0   ;;  %vm186_vm1 = vcmask 261120   ;;  %v964_v1 = vld [vmem:[#allocation7] sm:$0xff]  }
  0x80   :  { %851 = vmatprep.subr.bf16.mxu0 %v1233_v0  ;;  %867 = vmatprep.mubr.msk.bf16.mxu0 %vm1234_vm0, %v1233_v0  ;;  %v191_v2 = vsel %vm186_vm1, %v964_v1, 0  ;;  %v965_v3 = vld [vmem:[#allocation7 + $0x8] sm:$0xff]   ;;  %v966_v4 = vld [vmem:[#allocation7 + $0x10] sm:$0xff]   ;;  %v967_v5 = vld [vmem:[#allocation7 + $0x18] sm:$0xff]   ;;  %vm258_vm2 = vcmask 130048   ;;  %s1235_s6 = smov [#allocation14]  }
  0x81   :  { %871 = vmatprep.subr.bf16.mxu1 %v1233_v0  ;;  %873 = vmatprep.mubr.msk.bf16.mxu1 %vm1234_vm0, %v1233_v0  ;;  %v194_v6 = vsel %vm186_vm1, %v965_v3, 0  ;;  %v197_v7 = vsel %vm186_vm1, %v966_v4, 0  ;;  %v200_v8 = vsel %vm186_vm1, %v967_v5, 0  ;;  %v968_v9 = vld [vmem:[#allocation7 + $0x20] sm:$0xff]   ;;  %v969_v11 = vld [vmem:[#allocation7 + $0x28] sm:$0xff]   ;;  %v970_v13 = vld [vmem:[#allocation7 + $0x30] sm:$0xff]  }
  0x82   :  { %852 = vmatpush3.bf16.xpose.msra.mxu0 %v191_v2  ;;  %v203_v10 = vsel %vm186_vm1, %v968_v9, 0  ;;  %v206_v12 = vsel %vm186_vm1, %v969_v11, 0  ;;  %v209_v14 = vsel %vm186_vm1, %v970_v13, 0  ;;  %v971_v15 = vld [vmem:[#allocation7 + $0x38] sm:$0xff]   ;;  %v127_v17 = vld [vmem:[#allocation2] sm:$0xff]  ;;  %v128_v18 = vld [vmem:[#allocation2 + $0x8] sm:$0xff] }
  0x83   :  { %853 = vmatprep.subr.bf16.mxu0 %v1233_v0  ;;  %v212_v16 = vsel %vm186_vm1, %v971_v15, 0  ;;  %v129_v19 = vpack.c.bf16 %v128_v18, %v127_v17  ;;  %v124_v25 = vld [vmem:[#allocation5] sm:$0xff]  ;;  %v125_v26 = vld [vmem:[#allocation5 + $0x8] sm:$0xff]  ;;  %v972_v30 = vld [vmem:[#allocation8] sm:$0xff]   ;;  %s741_s9 = sshll.u32 %s1235_s6, 4  ;;  %s742_s9 = int_to_ptr.vmem [resolvable:$true] %s741_s9 }
  0x84   :  { %v1409_v29 = vpack.c.bf16 %v125_v26, %v124_v25  ;;  %v973_v31 = vld [vmem:[#allocation8 + $0x8] sm:$0xff]   ;;  %v974_v32 = vld [vmem:[#allocation8 + $0x10] sm:$0xff]   ;;  %v975_v33 = vld [vmem:[#allocation8 + $0x18] sm:$0xff]   ;;  %s1166_s26 = scalar_lea.vmem %s742_s9, 256  ;;  %p1171_p1 = scmp.lt.s32.totalorder %s742_s9, %s742_s9 }
  0x85   :  { %v976_v34 = vld [vmem:[#allocation8 + $0x20] sm:$0xff]   ;;  %v977_v35 = vld [vmem:[#allocation8 + $0x28] sm:$0xff]   ;;  %v978_v36 = vld [vmem:[#allocation8 + $0x30] sm:$0xff]   ;;  %p1167_p0 = scmp.ne.s32.totalorder %s742_s9, %s1166_s26  ;;  %p1172_p2 = scmp.lt.s32.totalorder %s1166_s26, %s1166_s26 }
  0x86   :  { %v979_v37 = vld [vmem:[#allocation8 + $0x38] sm:$0xff]   ;;  %v980_v50 = vld [vmem:[#allocation10] sm:$0xff]   ;;  %v981_v51 = vld [vmem:[#allocation10 + $0x8] sm:$0xff]  }
  0x87   :  { %v982_v52 = vld [vmem:[#allocation10 + $0x10] sm:$0xff]   ;;  %v983_v53 = vld [vmem:[#allocation10 + $0x18] sm:$0xff]   ;;  %v984_v54 = vld [vmem:[#allocation10 + $0x20] sm:$0xff]   ;;  %p1173_p3 = por %p1172_p2, %p1171_p1 }
  0x88   :  { %v985_v55 = vld [vmem:[#allocation10 + $0x28] sm:$0xff]   ;;  %v986_v56 = vld [vmem:[#allocation10 + $0x30] sm:$0xff]   ;;  %v987_v57 = vld [vmem:[#allocation10 + $0x38] sm:$0xff]  }
  0x89   :  { %v988_v5 = vld [vmem:[#allocation11] sm:$0xff]   ;;  %v994_v11 = vld [vmem:[#allocation11 + $0x30] sm:$0xff]   ;;  %p1174_p4 = pnand %p1173_p3, %p1167_p0 }
  0x8a   :  { %854 = vmatpush3.bf16.xpose.msra.mxu0 %v194_v6  ;;  %v989_v6 = vld [vmem:[#allocation11 + $0x8] sm:$0xff]   ;;  %v992_v9 = vld [vmem:[#allocation11 + $0x20] sm:$0xff]  }
  0x8b   :  { %855 = vmatprep.subr.bf16.mxu0 %v1233_v0  ;;  %v800_v18 = vld [vmem:[#allocation13] ss:$0 sm:$0xff] }
  0x92   :  { %856 = vmatpush3.bf16.xpose.msra.mxu0 %v197_v7  ;;  %v990_v7 = vld [vmem:[#allocation11 + $0x10] sm:$0xff]  }
  0x93   :  { %857 = vmatprep.subr.bf16.mxu0 %v1233_v0 }
  0x9a   :  { %858 = vmatpush3.bf16.xpose.msra.mxu0 %v200_v8  ;;  %v991_v8 = vld [vmem:[#allocation11 + $0x18] sm:$0xff]  }
  0x9b   :  { %859 = vmatprep.subr.bf16.mxu0 %v1233_v0 }
  0xa2   :  { %860 = vmatpush3.bf16.xpose.msra.mxu0 %v203_v10  ;;  %v993_v10 = vld [vmem:[#allocation11 + $0x28] sm:$0xff]  }
  0xa3   :  { %861 = vmatprep.subr.bf16.mxu0 %v1233_v0 }
  0xaa   :  { %862 = vmatpush3.bf16.xpose.msra.mxu0 %v206_v12  ;;  %v995_v12 = vld [vmem:[#allocation11 + $0x38] sm:$0xff]  }
  0xab   :  { %863 = vmatprep.subr.bf16.mxu0 %v1233_v0 }
  0xb2   :  { %864 = vmatpush3.bf16.xpose.msra.mxu0 %v209_v14 }
  0xb3   :  { %865 = vmatprep.subr.bf16.mxu0 %v1233_v0 }
  0xba   :  { %866 = vmatpush3.bf16.xpose.msra.mxu0 %v212_v16 }
  0xbb   :  { %923 = vmatprep.subr.bf16.mxu0 %v1233_v0 }
  0xc1   :  { %868 = vmatmul.mubr.msk.bf16.vlgmr.msra.gmra.mrb[0].mxu0 %vm186_vm1, %v129_v19 }
  0xc2   :  { %925 = vmatprep.mubr.msk.bf16.mxu0 %vm1234_vm0, %v1233_v0 }
 0x194   :  { %v248_v20 = vpop.f32.mrb[0].mxu0 }
 0x195   :  { %v869_v21 = vpop.f32.mrb[1].mxu0  ;;  %996 = vtanh.f32 %v248_v20 }
 0x196   :  { %v251_v22 = vpop.f32.mrb[2].mxu0 }
 0x197   :  { %998 = vtanh.f32 %v251_v22  ;;  %v870_v23 = vpop.f32.mrb[3].mxu0 }
 0x19f   :  { %v997_v24 = vpop.eup %996 }
 0x1a1   :  { %v999_v27 = vpop.eup %998 }
 0x1a2   :  { %v257_v28 = vpack.c.bf16 %v999_v27, %v997_v24 }
 0x1a4   :  { %872 = vmatpush3.bf16.msra.mxu1 %v257_v28 }
 0x1a5   :  { %877 = vmatprep.subr.bf16.mxu1 %v1233_v0 }
 0x1a7   :  { %874 = vmatmul.mubr.msk.bf16.vlgmr.msra.gmra.mrb[0].mxu1 %vm258_vm2, %v1409_v29 }
 0x1a8   :  { %893 = vmatprep.mubr.msk.bf16.mxu1 %vm1234_vm0, %v1233_v0 }
 0x1ad   :  { %878 = vmatpush3.bf16.xpose.msra.mxu1 %v972_v30 }
 0x1ae   :  { %879 = vmatprep.subr.bf16.mxu1 %v1233_v0 }
 0x1b5   :  { %880 = vmatpush3.bf16.xpose.msra.mxu1 %v973_v31 }
 0x1b6   :  { %881 = vmatprep.subr.bf16.mxu1 %v1233_v0 }
 0x1bd   :  { %882 = vmatpush3.bf16.xpose.msra.mxu1 %v974_v32 }
 0x1be   :  { %883 = vmatprep.subr.bf16.mxu1 %v1233_v0 }
 0x1c5   :  { %884 = vmatpush3.bf16.xpose.msra.mxu1 %v975_v33 }
 0x1c6   :  { %885 = vmatprep.subr.bf16.mxu1 %v1233_v0 }
 0x1cd   :  { %886 = vmatpush3.bf16.xpose.msra.mxu1 %v976_v34 }
 0x1ce   :  { %887 = vmatprep.subr.bf16.mxu1 %v1233_v0 }
 0x1d5   :  { %888 = vmatpush3.bf16.xpose.msra.mxu1 %v977_v35 }
 0x1d6   :  { %889 = vmatprep.subr.bf16.mxu1 %v1233_v0 }
 0x1dd   :  { %890 = vmatpush3.bf16.xpose.msra.mxu1 %v978_v36 }
 0x1de   :  { %891 = vmatprep.subr.bf16.mxu1 %v1233_v0 }
 0x1e5   :  { %892 = vmatpush3.bf16.xpose.msra.mxu1 %v979_v37 }
 0x1e6   :  { %897 = vmatprep.subr.bf16.mxu1 %v1233_v0 }
 0x27a   :  { %v296_v38 = vpop.f32.mrb[0].mxu1 }
 0x27b   :  { %v875_v39 = vpop.f32.mrb[1].mxu1 }
 0x27c   :  { %v299_v40 = vpop.f32.mrb[2].mxu1 }
 0x27d   :  { %v303_v41 = vpack.c.bf16 %v299_v40, %v296_v38  ;;  %v876_v42 = vpop.f32.mrb[3].mxu1 }
 0x27f   :  { %894 = vmatmul.mubr.bf16.vlgmr.msra.gmra.mrb[4].mxu1 %v303_v41 }
 0x280   :  { %899 = vmatprep.mubr.msk.bf16.mxu1 %vm1234_vm0, %v1233_v0 }
 0x352   :  { %v402_v43 = vpop.f32.mrb[4].mxu1 }
 0x353   :  { %v895_v44 = vpop.f32.mrb[5].mxu1  ;;  %1000 = vtanh.f32 %v402_v43 }
 0x354   :  { %v405_v45 = vpop.f32.mrb[6].mxu1 }
 0x355   :  { %1002 = vtanh.f32 %v405_v45  ;;  %v896_v46 = vpop.f32.mrb[7].mxu1 }
 0x35d   :  { %v1001_v47 = vpop.eup %1000 }
 0x35f   :  { %v1003_v48 = vpop.eup %1002 }
 0x360   :  { %v411_v49 = vpack.c.bf16 %v1003_v48, %v1001_v47 }
 0x362   :  { %898 = vmatpush3.bf16.msra.mxu1 %v411_v49 }
 0x363   :  { %903 = vmatprep.subr.bf16.mxu1 %v1233_v0 }
 0x365   :  { %900 = vmatmul.mubr.msk.bf16.vlgmr.msra.gmra.mrb[8].mxu1 %vm258_vm2, %v1409_v29 }
 0x366   :  { %919 = vmatprep.mubr.msk.bf16.mxu1 %vm1234_vm0, %v1233_v0 }
 0x36b   :  { %904 = vmatpush3.bf16.xpose.msra.mxu1 %v980_v50 }
 0x36c   :  { %905 = vmatprep.subr.bf16.mxu1 %v1233_v0 }
 0x373   :  { %906 = vmatpush3.bf16.xpose.msra.mxu1 %v981_v51 }
 0x374   :  { %907 = vmatprep.subr.bf16.mxu1 %v1233_v0 }
 0x37b   :  { %908 = vmatpush3.bf16.xpose.msra.mxu1 %v982_v52 }
 0x37c   :  { %909 = vmatprep.subr.bf16.mxu1 %v1233_v0 }
 0x383   :  { %910 = vmatpush3.bf16.xpose.msra.mxu1 %v983_v53 }
 0x384   :  { %911 = vmatprep.subr.bf16.mxu1 %v1233_v0 }
 0x38b   :  { %912 = vmatpush3.bf16.xpose.msra.mxu1 %v984_v54 }
 0x38c   :  { %913 = vmatprep.subr.bf16.mxu1 %v1233_v0 }
 0x393   :  { %914 = vmatpush3.bf16.xpose.msra.mxu1 %v985_v55 }
 0x394   :  { %915 = vmatprep.subr.bf16.mxu1 %v1233_v0 }
 0x39b   :  { %916 = vmatpush3.bf16.xpose.msra.mxu1 %v986_v56 }
 0x39c   :  { %917 = vmatprep.subr.bf16.mxu1 %v1233_v0 }
 0x3a3   :  { %918 = vmatpush3.bf16.xpose.msra.mxu1 %v987_v57 }
 0x438   :  { %v446_v58 = vpop.f32.mrb[8].mxu1 }
 0x439   :  { %v901_v59 = vpop.f32.mrb[9].mxu1 }
 0x43a   :  { %v449_v60 = vpop.f32.mrb[10].mxu1 }
 0x43b   :  { %v453_v61 = vpack.c.bf16 %v449_v60, %v446_v58  ;;  %v902_v62 = vpop.f32.mrb[11].mxu1 }
 0x43d   :  { %920 = vmatmul.mubr.bf16.vlgmr.msra.gmra.mrb[12].mxu1 %v453_v61 }
 0x510   :  { %v552_v63 = vpop.f32.mrb[12].mxu1 }
 0x511   :  { %v921_v1 = vpop.f32.mrb[13].mxu1 }
 0x512   :  { %v555_v2 = vpop.f32.mrb[14].mxu1 }
 0x513   :  { %v559_v3 = vpack.c.bf16 %v555_v2, %v552_v63  ;;  %v922_v4 = vpop.f32.mrb[15].mxu1 }
 0x515   :  { %924 = vmatpush3.bf16.msra.mxu0 %v559_v3 }
 0x516   :  { %929 = vmatprep.subr.bf16.mxu0 %v1233_v0 }
 0x518   :  { %926 = vmatmul.mubr.msk.bf16.vlgmr.msra.gmra.mrb[4].mxu0 %vm258_vm2, %v1409_v29 }
 0x519   :  { %945 = vmatprep.mubr.msk.bf16.mxu0 %vm1234_vm0, %v1233_v0 }
 0x51e   :  { %930 = vmatpush3.bf16.xpose.msra.mxu0 %v988_v5 }
 0x51f   :  { %931 = vmatprep.subr.bf16.mxu0 %v1233_v0 }
 0x526   :  { %932 = vmatpush3.bf16.xpose.msra.mxu0 %v989_v6 }
 0x527   :  { %933 = vmatprep.subr.bf16.mxu0 %v1233_v0 }
 0x52e   :  { %934 = vmatpush3.bf16.xpose.msra.mxu0 %v990_v7 }
 0x52f   :  { %935 = vmatprep.subr.bf16.mxu0 %v1233_v0 }
 0x536   :  { %936 = vmatpush3.bf16.xpose.msra.mxu0 %v991_v8 }
 0x537   :  { %937 = vmatprep.subr.bf16.mxu0 %v1233_v0 }
 0x53e   :  { %938 = vmatpush3.bf16.xpose.msra.mxu0 %v992_v9 }
 0x53f   :  { %939 = vmatprep.subr.bf16.mxu0 %v1233_v0 }
 0x546   :  { %940 = vmatpush3.bf16.xpose.msra.mxu0 %v993_v10 }
 0x547   :  { %941 = vmatprep.subr.bf16.mxu0 %v1233_v0 }
 0x54e   :  { %942 = vmatpush3.bf16.xpose.msra.mxu0 %v994_v11 }
 0x54f   :  { %943 = vmatprep.subr.bf16.mxu0 %v1233_v0 }
 0x556   :  { %944 = vmatpush3.bf16.xpose.msra.mxu0 %v995_v12 }
 0x5eb   :  { %v594_v13 = vpop.f32.mrb[4].mxu0 }
 0x5ec   :  { %601 = vst [vmem:[#allocation14] sm:$0xff] %v594_v13  ;;  %v927_v14 = vpop.f32.mrb[5].mxu0 }
 0x5ed   :  { %v597_v15 = vpop.f32.mrb[6].mxu0 }
 0x5ee   :  { %602 = vst [vmem:[#allocation14 + $0x8] sm:$0xff] %v597_v15  ;;  %v603_v16 = vpack.c.bf16 %v597_v15, %v594_v13  ;;  %v928_v17 = vpop.f32.mrb[7].mxu0 }
 0x5f0   :  { %946 = vmatmul.mubr.bf16.vlgmr.msra.gmra.mrb[8].mxu0 %v603_v16 }
 0x6c3   :  { %v709_v19 = vpop.f32.mrb[8].mxu0 }
 0x6c4   :  { %v710_v20 = vadd.f32 %v800_v18, %v709_v19  ;;  %v947_v21 = vpop.f32.mrb[9].mxu0 }
 0x6c5   :  { %v712_v22 = vpop.f32.mrb[10].mxu0 }
 0x6c6   :  { %716 = vmax.xlane.f32.xlu0 %v710_v20  ;;  %v948_v23 = vpop.f32.mrb[11].mxu0  ;;  %v713_v24 = vadd.f32 %v800_v18, %v712_v22 }
 0x6ca   :  { %718 = vmax.xlane.f32.xlu0 %v713_v24 }
 0x753   :  { %v717_v0 = vpop.xlane.xlu0 %716 }
 0x754   :  { %v720_v25 = vsub.f32 %v710_v20, %v717_v0 }
 0x756   :  { %v722_v26 = vmul.f32 1.442695, %v720_v25 }
 0x757   :  { %v719_v27 = vpop.xlane.xlu0 %718 }
 0x758   :  { %1004 = vpow2.f32 %v722_v26  ;;  %v721_v28 = vsub.f32 %v713_v24, %v719_v27 }
 0x75a   :  { %v724_v29 = vmul.f32 1.442695, %v721_v28 }
 0x75c   :  { %1006 = vpow2.f32 %v724_v29 }
 0x762   :  { %v1005_v30 = vpop.eup %1004 }
 0x763   :  { %726 = vadd.xlane.f32.xlu1 %v1005_v30 }
 0x766   :  { %v1007_v31 = vpop.eup %1006 }
 0x767   :  { %728 = vadd.xlane.f32.xlu1 %v1007_v31 }
 0x768   :  { %1177 = shalt.err (!%p1174_p4)
}
 0x769   :  { %s1178_s1 = scalar_lea.hbm %s1487_s7, 256 }
 0x76a   :  { %p1179_p5 = scmp.ne.s32.totalorder %s1487_s7, %s1178_s1  ;;  %p1182_p6 = scmp.lt.u32.totalorder %s1178_s1, %s1487_s7 }
 0x76c   :  { %p1184_p7 = pnand %p1182_p6, %p1179_p5 }
 0x76e   :  { %1187 = shalt.err (!%p1184_p7)
}
 0x76f   :  { %747 = dma.vmem_to_hbm [thread:$0]  %s742_s9, 256, %s1487_s7, [#allocation4], %s1223_s15, %s1223_s15, %s1224_s16  }
 0x770   :  { %s1236_s14 = smov [#allocation15]  }
 0x771   :  { %s753_s2 = sshll.u32 %s1236_s14, 4  ;;  %s754_s2 = int_to_ptr.vmem [resolvable:$true] %s753_s2 }
 0x772   :  { %s1188_s27 = scalar_lea.vmem %s754_s2, 256  ;;  %p1193_p9 = scmp.lt.s32.totalorder %s754_s2, %s754_s2 }
 0x773   :  { %p1189_p8 = scmp.ne.s32.totalorder %s754_s2, %s1188_s27  ;;  %p1194_p10 = scmp.lt.s32.totalorder %s1188_s27, %s1188_s27 }
 0x775   :  { %p1195_p11 = por %p1194_p10, %p1193_p9 }
 0x777   :  { %p1196_p12 = pnand %p1195_p11, %p1189_p8 }
 0x7f0   :  { %v727_v32 = vpop.xlane.xlu1 %726 }
 0x7f1   :  { %1008 = vrcp.f32 %v727_v32 }
 0x7f4   :  { %v729_v33 = vpop.xlane.xlu1 %728 }
 0x7f5   :  { %1010 = vrcp.f32 %v729_v33 }
 0x7fb   :  { %v1009_v34 = vpop.eup %1008 }
 0x7fc   :  { %v732_v35 = vmul.f32 %v1009_v34, %v1005_v30 }
 0x7fe   :  { %734 = vst [vmem:[#allocation15] sm:$0xff] %v732_v35 }
 0x7ff   :  { %v1011_v36 = vpop.eup %1010 }
 0x800   :  { %v733_v37 = vmul.f32 %v1011_v36, %v1007_v31 }
 0x802   :  { %735 = vst [vmem:[#allocation15 + $0x8] sm:$0xff] %v733_v37 }
 0x803   :  { %1199 = shalt.err (!%p1196_p12)
}
 0x804   :  { %s1200_s18 = scalar_lea.hbm %s1488_s8, 256 }
 0x805   :  { %p1201_p13 = scmp.ne.s32.totalorder %s1488_s8, %s1200_s18  ;;  %p1204_p0 = scmp.lt.u32.totalorder %s1200_s18, %s1488_s8 }
 0x807   :  { %p1206_p1 = pnand %p1204_p0, %p1201_p13 }
 0x809   :  { %1209 = shalt.err (!%p1206_p1)
}
 0x80a   :  { %759 = dma.vmem_to_hbm [thread:$0]  %s754_s2, 256, %s1488_s8, [#allocation16], %s1223_s15, %s1223_s15, %s1224_s16  }
 0x80b   :  { %1218 = dma.done.wait [#allocation4], 256  }
 0x80c   :  { %1219 = vsyncadd [#allocation4], 4294967040 }
 0x80d   :  { %1220 = dma.done.wait [#allocation16], 256  }
 0x80e   :  { %1221 = vsyncadd [#allocation16], 4294967040 }
 0x80f   :  { %766 = vsyncpa [#allocation3], 1 }
 0x810   :  { %767 = vsyncpa [#allocation6], 1 }
 0x811   :  { %768 = vsyncpa [#allocation9], 1 }
 0x812   :  { %769 = vsyncpa [#allocation12], 1 }
 0x813   :  { %770 = vsyncpa [#allocation4], 1 }
 0x814   :  { %771 = vsyncpa [#allocation16], 1 }

</bundles_post_ra>
